<compile_context>
chip_gen: v5e
topology: v5e:2x2
jax: 0.10.0
libtpu: 0.0.40
codegen_flags: <defaults>
</compile_context>

<pallas_src>
import jax
import jax.numpy as jnp
from jax.experimental import pallas as pl
from jax.experimental.pallas import tpu as pltpu


# ~8 MiB per tile: read+write of a tile takes >=5 us on every generation, so the
# ~0.35 us fixed per-grid-step overhead is <7% (v7x) / <2% (v6e/v5e).
# Double-buffered in+out footprint = 4x tile = 32 MiB < the 48 MiB we request.
_TILE_TARGET_BYTES = 8 * 1024 * 1024
_VMEM_LIMIT_BYTES = 48 * 1024 * 1024          # < 64 MiB physical on v7x per TC
_MIN_PALLAS_BYTES = 1 * 1024 * 1024           # below this, XLA fusion wins


def _i_kernel(d_ref, x_ref, o_ref):
    # d_ref: (1, 1) scalar in SMEM; x_ref / o_ref: (block_rows, W) tiles in VMEM.
    d = d_ref[0, 0]
    o_ref[...] = x_ref[...] + d - d


def _sublane_multiple(itemsize):
    # Packed sublane granularity per element width.
    return {4: 8, 2: 16, 1: 32}.get(itemsize, 8)


def _pick_lane_width(n):
    # Widest lane-dense width (multiple of 128) that divides n exactly.
    for cand in (4096, 2048, 1024, 512, 256, 128):
        if n % cand == 0:
            return cand
    return 0  # ragged: caller uses the fused-jnp fallback (no pad/copy)


def _pick_block_rows(rows, width, itemsize, sub):
    if rows <= sub:
        return rows  # full-extent second-to-last dim (always legal)
    target = max(sub, _TILE_TARGET_BYTES // (width * itemsize))
    br = min(rows, target)
    # Keep >=2 grid steps whenever rows permit: lets v7x's two TensorCores
    # both work (dimension_semantics="parallel") and keeps DMA/compute overlap.
    if rows >= 2 * sub:
        br = min(br, rows // 2)
    br = max((br // sub) * sub, sub)
    return br


def i_forward(x, dummy, *, force_pallas=False):
    """I.forward: x + dummy - dummy, preserving the module's fp semantics."""
    dtype = x.dtype

    # Non-float inputs: PyTorch type-promotes (int tensor + float param -> float).
    if not jnp.issubdtype(dtype, jnp.floating):
        return x + dummy - dummy

    n = x.size
    itemsize = jnp.dtype(dtype).itemsize
    width = _pick_lane_width(n)
    too_small = n * itemsize < _MIN_PALLAS_BYTES

    if width == 0 or (too_small and not force_pallas):
        # Ragged (size not a multiple of 128) or tiny input: a fused XLA
        # elementwise op avoids any pad/slice passes and the custom-call launch.
        d = jnp.asarray(dummy, dtype=dtype).reshape(())
        return x + d - d

    sub = _sublane_multiple(itemsize)
    # Pure metadata reshape of a contiguous array — no HBM copy.
    x2d = x.reshape(n // width, width)
    rows = x2d.shape[0]
    br = _pick_block_rows(rows, width, itemsize, sub)
    grid = (pl.cdiv(rows, br),)

    # Scalar parameter in SMEM, cast to the compute dtype of x.
    d2d = jnp.asarray(dummy, dtype=dtype).reshape(1, 1)

    out2d = pl.pallas_call(
        _i_kernel,
        out_shape=jax.ShapeDtypeStruct((rows, width), dtype),
        grid=grid,
        in_specs=[
            pl.BlockSpec(memory_space=pltpu.SMEM),           # dummy scalar
            pl.BlockSpec((br, width), lambda i: (i, 0)),     # x tile
        ],
        out_specs=pl.BlockSpec((br, width), lambda i: (i, 0)),
        # Output may reuse x's HBM buffer (XLA copies if x is still live).
        input_output_aliases={1: 0},
        compiler_params=pltpu.CompilerParams(
            dimension_semantics=("parallel",),
            vmem_limit_bytes=_VMEM_LIMIT_BYTES),
        cost_estimate=pl.CostEstimate(
            flops=2 * n,
            transcendentals=0,
            bytes_accessed=2 * n * itemsize),
    )(d2d, x2d)

    return out2d.reshape(x.shape)


if __name__ == "__main__":
    key = jax.random.PRNGKey(0)

    # Deterministic parameter init: torch.ones(1) -> jnp.ones(1)
    dummy = jnp.ones((1,), dtype=jnp.float32)

    # Small NCHW input consistent with the module (shape-agnostic forward).
    x = jax.random.normal(key, (2, 4, 16, 16), dtype=jnp.float32)

    # 1) Exercise the Pallas kernel itself (forced past the small-input path).
    out = jax.block_until_ready(i_forward(x, dummy, force_pallas=True))
    assert out.shape == x.shape and out.dtype == x.dtype
    assert jnp.allclose(out, x + 1.0 - 1.0, atol=0.0)  # exact fp semantics

    # 2) Auto path for the same small tensor (fused XLA fast path).
    out_auto = jax.block_until_ready(i_forward(x, dummy))
    assert jnp.allclose(out_auto, x + 1.0 - 1.0, atol=0.0)

    # 3) Ragged size (not a multiple of 128) -> fused-jnp fallback, no padding.
    x_odd = jax.random.normal(jax.random.PRNGKey(1), (2, 3, 5, 7),
                              dtype=jnp.float32)
    out_odd = jax.block_until_ready(i_forward(x_odd, dummy))
    assert out_odd.shape == x_odd.shape and out_odd.dtype == x_odd.dtype
    assert jnp.allclose(out_odd, x_odd + 1.0 - 1.0, atol=0.0)

    # 4) Multi-step grid through the kernel (still a small shape: 512 KiB).
    x_big = jax.random.normal(jax.random.PRNGKey(2), (8, 4, 32, 128),
                              dtype=jnp.float32)
    out_big = jax.block_until_ready(i_forward(x_big, dummy, force_pallas=True))
    assert out_big.shape == x_big.shape and out_big.dtype == x_big.dtype
    assert jnp.allclose(out_big, x_big + 1.0 - 1.0, atol=0.0)

    print("KERNEL_OK")
</pallas_src>

<mosaic_0001>
module attributes {stable_mosaic.version = 11 : i64} {
  func.func @_i_kernel(%arg0: i32, %arg1: memref<1x1xf32, #tpu.memory_space<smem>>, %arg2: memref<1x2048xf32, #tpu.memory_space<vmem>>, %arg3: memref<1x2048xf32, #tpu.memory_space<vmem>>) attributes {dimension_semantics = [#tpu.dimension_semantics<parallel>], iteration_bounds = array<i64: 1>, scalar_prefetch = 0 : i64, scratch_operands = 0 : i64, tpu.core_type = #tpu.core_type<tc>, window_params = [{transform_indices = @transform_0, window_bounds = array<i64: 1, 1>}, {transform_indices = @transform_1, window_bounds = array<i64: 1, 2048>}, {transform_indices = @transform_2, window_bounds = array<i64: 1, 2048>}]} {
    %c0 = arith.constant 0 : index
    %c0_0 = arith.constant 0 : index
    %0 = memref.load %arg1[%c0, %c0_0] : memref<1x1xf32, #tpu.memory_space<smem>>
    %c0_1 = arith.constant 0 : index
    %c0_2 = arith.constant 0 : index
    %1 = vector.load %arg2[%c0_1, %c0_2] : memref<1x2048xf32, #tpu.memory_space<vmem>>, vector<1x2048xf32>
    %2 = vector.broadcast %0 : f32 to vector<1x2048xf32>
    %3 = arith.addf %1, %2 : vector<1x2048xf32>
    %4 = vector.broadcast %0 : f32 to vector<1x2048xf32>
    %5 = arith.subf %3, %4 : vector<1x2048xf32>
    %c0_3 = arith.constant 0 : index
    %c0_4 = arith.constant 0 : index
    %6 = vector.load %arg3[%c0_3, %c0_4] : memref<1x2048xf32, #tpu.memory_space<vmem>>, vector<1x2048xf32>
    tpu.vector_store %arg3[%c0_3, %c0_4], %5 {strides = array<i32>} : memref<1x2048xf32, #tpu.memory_space<vmem>>, vector<1x2048xf32>,
    return
  }
  func.func @transform_0(%arg0: i32) -> (i32, i32) {
    %c0_i32 = arith.constant 0 : i32
    %c0_i32_0 = arith.constant 0 : i32
    %c0_i32_1 = arith.constant 0 : i32
    return %c0_i32, %c0_i32_0 : i32, i32
  }
  func.func @transform_1(%arg0: i32) -> (i32, i32) {
    %c0_i32 = arith.constant 0 : i32
    %c0_i32_0 = arith.constant 0 : i32
    return %arg0, %c0_i32 : i32, i32
  }
  func.func @transform_2(%arg0: i32) -> (i32, i32) {
    %c0_i32 = arith.constant 0 : i32
    %c0_i32_0 = arith.constant 0 : i32
    return %arg0, %c0_i32 : i32, i32
  }
}

</mosaic_0001>

<bundles_post_ra>
// kernel: tpu_custom_call.1
= control target key start
LH: loop header
LB: loop body
LE: loop exit
PB: predicated region body
PF: predicated region fallthrough
CT: control target
= control target key end

     0   :  { %8 = vsyncpa [#allocation4], 0  ;;  %s134_s0 = inlined_call_operand.<no memory space> [shape: f32[1,1], index: 0, kind: input, shape index: {}]   ;;  %s135_s1 = inlined_call_operand.hbm [shape: f32[1,2048], index: 1, kind: input, shape index: {}, may-alias: {1,2}]   ;;  %s136_s2 = inlined_call_operand.hbm [shape: f32[1,2048], index: 2, kind: output, shape index: {}, may-alias: {1,2}]  }
   0x1   :  { %9 = vsyncpa [#allocation5], 0  ;;  %s17_s11 = sshll.u32 %s135_s1, 4  ;;  %s108_s12 = smov [#allocation3]   ;;  %s18_s11 = int_to_ptr.hbm [resolvable:$true] %s17_s11 }
   0x2   :  { %s19_s13 = sshll.u32 %s108_s12, 4  ;;  %s20_s13 = int_to_ptr.vmem [resolvable:$true] %s19_s13 }
   0x3   :  { %22 = dma.hbm_to_vmem [thread:$0]  %s18_s11, 256, %s20_s13, [#allocation4]  }
   0x4   :  { %104 = dma.done.wait [#allocation4], 256  }
   0x5   :  { %105 = vsyncadd [#allocation4], 4294967040  ;;  %v30_v0 = vstv %s134_s0  ;;  %v28_v1 = vld [vmem:[#allocation3] sm:$0xff]  ;;  %v29_v2 = vld [vmem:[#allocation3 + $0x8] sm:$0xff]  ;;  %s109_s16 = smov [#allocation6]   ;;  %s44_s1 = sshll.u32 %s136_s2, 4  ;;  %s45_s1 = int_to_ptr.hbm [resolvable:$true] %s44_s1 }
   0x6   :  { %v31_v3 = vadd.f32 %v30_v0, %v28_v1  ;;  %v32_v4 = vadd.f32 %v30_v0, %v29_v2  ;;  %s42_s17 = sshll.u32 %s109_s16, 4  ;;  %s43_s17 = int_to_ptr.vmem [resolvable:$true] %s42_s17 }
   0x8   :  { %v33_v5 = vsub.f32 %v31_v3, %v30_v0  ;;  %v34_v6 = vsub.f32 %v32_v4, %v30_v0 }
   0xa   :  { %35 = vst [vmem:[#allocation6] sm:$0xff] %v33_v5 }
   0xb   :  { %36 = vst [vmem:[#allocation6 + $0x8] sm:$0xff] %v34_v6 }
   0xc   :  { %47 = dma.vmem_to_hbm [thread:$0]  %s43_s17, 256, %s45_s1, [#allocation5]  }
   0xd   :  { %106 = dma.done.wait [#allocation5], 256  }
   0xe   :  { %107 = vsyncadd [#allocation5], 4294967040 }
   0xf   :  { %52 = vsyncpa [#allocation4], 1 }
  0x10   :  { %53 = vsyncpa [#allocation5], 1 }

</bundles_post_ra>
